<compile_context>
chip_gen: v7x
topology: tpu7x:2x2x1
jax: 0.10.0
libtpu: 0.0.40
codegen_flags: <defaults>
</compile_context>

<pallas_src>
import functools

import jax
import jax.numpy as jnp
from jax.experimental import pallas as pl
from jax.experimental.pallas import tpu as pltpu


def _round_up(x, m):
    return ((x + m - 1) // m) * m


def _pick_chunk(seq_len, b_pad, i_pad, h_pad, x_bytes, budget_bytes=12 << 20):
    """Largest per-chunk timestep count whose VMEM working set fits budget."""
    per_step = b_pad * (2 * i_pad * x_bytes   # double-buffered x chunk
                        + 2 * h_pad * 4)      # double-buffered xp scratch
    return int(min(seq_len, 256, max(1, budget_bytes // max(per_step, 1))))


def _rnn_kernel(x_ref, wih_ref, whh_ref, b_ref, wfc_ref, bfc_ref,
                out_ref, xp_ref, h_ref, *, seq_len, chunk, b_pad, unroll):
    c = pl.program_id(0)
    n_chunks = pl.num_programs(0) - 1          # grid has one extra drain step
    rows = chunk * b_pad

    @pl.when(c == 0)
    def _init():
        h_ref[...] = jnp.zeros_like(h_ref)

    # Phase 1 (chunk c): input projection for every timestep in the chunk as a
    # single MXU GEMM, RNN bias (b_ih + b_hh) folded in. Written to the
    # double-buffered xp scratch; consumed by the recurrence one grid step
    # later (skewed pipeline).
    @pl.when(c < n_chunks)
    def _project():
        slot = jax.lax.rem(c, 2)
        proj = (jnp.dot(x_ref[...], wih_ref[...],
                        preferred_element_type=jnp.float32) + b_ref[...])
        off = pl.multiple_of(slot * rows, rows)
        xp_ref[pl.ds(off, rows), :] = proj

    # Phase 2 (chunk c-1): serial recurrence using last step's projection.
    # Only a (Bp,Hp)@(Hp,Hp) dot + tanh per timestep stays on the serial path;
    # it is independent of Phase 1 above, so the scheduler can overlap them.
    @pl.when(c > 0)
    def _recur():
        cc = c - 1
        slot = jax.lax.rem(cc, 2)
        whh = whh_ref[...]                      # hoist weight load out of loop
        base = cc * chunk

        def step(t, h):
            row = pl.multiple_of(slot * rows + t * b_pad, b_pad)
            pre = xp_ref[pl.ds(row, b_pad), :] + jnp.dot(
                h, whh, preferred_element_type=jnp.float32)
            h_new = jnp.tanh(pre)
            # Mask padded timesteps of the (possibly partial) last chunk.
            return jnp.where(base + t < seq_len, h_new, h)

        h_ref[...] = jax.lax.fori_loop(0, chunk, step, h_ref[...],
                                       unroll=unroll)

    # Final FC head on the last hidden state (lane-dense padded output).
    @pl.when(c == n_chunks)
    def _head():
        out_ref[...] = (jnp.dot(h_ref[...], wfc_ref[...],
                                preferred_element_type=jnp.float32)
                        + bfc_ref[...]).astype(out_ref.dtype)


def simple_rnn_forward(x, w_ih, w_hh, b_ih, b_hh, w_fc, b_fc,
                       *, chunk_size=None, compute_dtype=None):
    """x: (batch, seq, input_size)  ->  (batch, output_size)."""
    B, S, I = x.shape
    H = w_ih.shape[0]
    O = w_fc.shape[0]
    assert S >= 1, "sequence length must be >= 1"

    f32 = jnp.float32
    Bp = _round_up(B, 8)        # sublane-friendly batch
    Ip = _round_up(I, 128)      # lane-friendly feature dims
    Hp = _round_up(H, 128)
    Op = _round_up(O, 128)

    if compute_dtype is None:
        # bf16 MXU operands only pay off once the projection GEMM fills the
        # MXU; tiny shapes keep strict f32 numerics.
        compute_dtype = jnp.bfloat16 if (Ip >= 256 and Hp >= 256) else f32
    x_bytes = jnp.dtype(compute_dtype).itemsize

    Tc = chunk_size if chunk_size is not None else _pick_chunk(
        S, Bp, Ip, Hp, x_bytes)
    Tc = max(1, min(int(Tc), S))
    num_chunks = pl.cdiv(S, Tc)
    S_pad = num_chunks * Tc
    rows = Tc * Bp
    unroll = min(Tc, 8)

    # (B,S,I) -> (S,B,I), zero-pad seq/batch/lanes, cast, flatten. XLA fuses
    # transpose+pad+cast+reshape into one producer (no extra HBM round trips).
    x_sbi = jnp.transpose(x, (1, 0, 2)).astype(compute_dtype)
    x2d = jnp.pad(x_sbi, ((0, S_pad - S), (0, Bp - B), (0, Ip - I)))
    x2d = x2d.reshape(S_pad * Bp, Ip)

    # Pre-transposed, zero-padded weights so in-kernel matmuls are row-major.
    wih_t = jnp.pad(w_ih.T.astype(compute_dtype), ((0, Ip - I), (0, Hp - H)))
    whh_t = jnp.pad(w_hh.T.astype(f32), ((0, Hp - H), (0, Hp - H)))
    wfc_t = jnp.pad(w_fc.T.astype(f32), ((0, Hp - H), (0, Op - O)))
    b_rnn = jnp.pad((b_ih + b_hh).astype(f32).reshape(1, H),
                    ((0, 0), (0, Hp - H)))
    b_out = jnp.pad(b_fc.astype(f32).reshape(1, O), ((0, 0), (0, Op - O)))

    # Explicit VMEM budget (double-buffered inputs + scratch), with headroom.
    vmem_needed = (2 * rows * Ip * x_bytes + 2 * Ip * Hp * x_bytes
                   + 2 * (Hp * Hp + Hp * Op + Hp + Op + Bp * Op) * 4
                   + 2 * rows * Hp * 4 + Bp * Hp * 4)
    vmem_limit = int(min(max(int(vmem_needed * 1.3) + (4 << 20), 32 << 20),
                         100 << 20))

    flops = 2 * S * Bp * (Ip * Hp + Hp * Hp) + 2 * Bp * Hp * Op
    bytes_accessed = (x2d.size * x_bytes + Ip * Hp * x_bytes
                      + (Hp * Hp + Hp * Op + Hp + Op) * 4 + Bp * Op * 4)

    kernel = functools.partial(_rnn_kernel, seq_len=S, chunk=Tc, b_pad=Bp,
                               unroll=unroll)
    last_chunk = num_chunks - 1

    out_pad = pl.pallas_call(
        kernel,
        out_shape=jax.ShapeDtypeStruct((Bp, Op), f32),
        grid=(num_chunks + 1,),
        in_specs=[
            # x chunk (clamped on the extra drain step -> no re-fetch)
            pl.BlockSpec((rows, Ip), lambda c: (jnp.minimum(c, last_chunk), 0)),
            pl.BlockSpec((Ip, Hp), lambda c: (0, 0)),   # W_ih^T
            pl.BlockSpec((Hp, Hp), lambda c: (0, 0)),   # W_hh^T
            pl.BlockSpec((1, Hp), lambda c: (0, 0)),    # b_ih + b_hh
            pl.BlockSpec((Hp, Op), lambda c: (0, 0)),   # W_fc^T
            pl.BlockSpec((1, Op), lambda c: (0, 0)),    # b_fc
        ],
        out_specs=pl.BlockSpec((Bp, Op), lambda c: (0, 0)),
        scratch_shapes=[pltpu.VMEM((2 * rows, Hp), f32),  # xp double buffer
                        pltpu.VMEM((Bp, Hp), f32)],       # carried hidden h
        compiler_params=pltpu.CompilerParams(
            dimension_semantics=("arbitrary",),
            vmem_limit_bytes=vmem_limit),
        cost_estimate=pl.CostEstimate(flops=int(flops),
                                      transcendentals=int(S * Bp * Hp),
                                      bytes_accessed=int(bytes_accessed)),
    )(x2d, wih_t, whh_t, b_rnn, wfc_t, b_out)

    return out_pad[:B, :O].astype(x.dtype)


def _reference(x, w_ih, w_hh, b_ih, b_hh, w_fc, b_fc):
    B, S, I = x.shape
    H = w_ih.shape[0]
    h = jnp.zeros((B, H), jnp.float32)
    for t in range(S):
        h = jnp.tanh(x[:, t, :] @ w_ih.T + b_ih + h @ w_hh.T + b_hh)
    return h @ w_fc.T + b_fc


def _make_params(key, B, S, I, H, O):
    ks = jax.random.split(key, 7)
    scale = 1.0 / jnp.sqrt(H)
    x = jax.random.normal(ks[0], (B, S, I), jnp.float32)
    w_ih = jax.random.uniform(ks[1], (H, I), jnp.float32, -scale, scale)
    w_hh = jax.random.uniform(ks[2], (H, H), jnp.float32, -scale, scale)
    b_ih = jax.random.uniform(ks[3], (H,), jnp.float32, -scale, scale)
    b_hh = jax.random.uniform(ks[4], (H,), jnp.float32, -scale, scale)
    w_fc = jax.random.uniform(ks[5], (O, H), jnp.float32, -scale, scale)
    b_fc = jax.random.uniform(ks[6], (O,), jnp.float32, -scale, scale)
    return x, w_ih, w_hh, b_ih, b_hh, w_fc, b_fc


if __name__ == "__main__":
    key = jax.random.PRNGKey(0)
    k1, k2 = jax.random.split(key)

    # Case 1: module-spec shapes (single chunk), strict f32 check.
    p1 = _make_params(k1, 2, 8, 16, 32, 8)
    out1 = jax.block_until_ready(simple_rnn_forward(*p1))
    ref1 = _reference(*p1)
    assert out1.shape == (2, 8)
    assert jnp.allclose(out1, ref1, atol=1e-5, rtol=1e-5), "case1 mismatch"

    # Case 2: multi-chunk grid with a partial last chunk and odd padded dims.
    p2 = _make_params(k2, 3, 37, 20, 48, 10)
    out2 = jax.block_until_ready(simple_rnn_forward(*p2, chunk_size=16))
    ref2 = _reference(*p2)
    assert out2.shape == (3, 10)
    assert jnp.allclose(out2, ref2, atol=1e-4, rtol=1e-4), "case2 mismatch"

    # Case 3: bf16 MXU operands for the Phase-1 projection (f32 accumulate),
    # multi-chunk; looser tolerance reflects bf16 operand rounding.
    out3 = jax.block_until_ready(
        simple_rnn_forward(*p1, chunk_size=4, compute_dtype=jnp.bfloat16))
    assert jnp.allclose(out3, ref1, atol=5e-2, rtol=5e-2), "case3 mismatch"

    print("KERNEL_OK")
</pallas_src>

<mosaic_0001>
module attributes {stable_mosaic.version = 11 : i64} {
  func.func @_rnn_kernel(%arg0: i32, %arg1: memref<64x128xf32, #tpu.memory_space<vmem>>, %arg2: memref<128x128xf32, #tpu.memory_space<vmem>>, %arg3: memref<128x128xf32, #tpu.memory_space<vmem>>, %arg4: memref<1x128xf32, #tpu.memory_space<vmem>>, %arg5: memref<128x128xf32, #tpu.memory_space<vmem>>, %arg6: memref<1x128xf32, #tpu.memory_space<vmem>>, %arg7: memref<8x128xf32, #tpu.memory_space<vmem>>, %arg8: memref<128x128xf32, #tpu.memory_space<vmem>>, %arg9: memref<8x128xf32, #tpu.memory_space<vmem>>) attributes {dimension_semantics = [#tpu.dimension_semantics<arbitrary>], iteration_bounds = array<i64: 2>, scalar_prefetch = 0 : i64, scratch_operands = 2 : i64, tpu.core_type = #tpu.core_type<tc>, window_params = [{transform_indices = @transform_0, window_bounds = array<i64: 64, 128>}, {pipeline_mode = #tpu.pipeline_mode<synchronous>, transform_indices = @transform_1, window_bounds = array<i64: 128, 128>}, {pipeline_mode = #tpu.pipeline_mode<synchronous>, transform_indices = @transform_2, window_bounds = array<i64: 128, 128>}, {pipeline_mode = #tpu.pipeline_mode<synchronous>, transform_indices = @transform_3, window_bounds = array<i64: 1, 128>}, {pipeline_mode = #tpu.pipeline_mode<synchronous>, transform_indices = @transform_4, window_bounds = array<i64: 128, 128>}, {pipeline_mode = #tpu.pipeline_mode<synchronous>, transform_indices = @transform_5, window_bounds = array<i64: 1, 128>}, {pipeline_mode = #tpu.pipeline_mode<synchronous>, transform_indices = @transform_6, window_bounds = array<i64: 8, 128>}]} {
    %c0_i32 = arith.constant 0 : i32
    %0 = arith.cmpi eq, %arg0, %c0_i32 : i32
    %1 = arith.extui %0 : i1 to i32
    %c0_i32_0 = arith.constant 0 : i32
    %2 = arith.cmpi ne, %1, %c0_i32_0 : i32
    scf.if %2 {
      %cst = arith.constant 0.000000e+00 : f32
      %12 = vector.broadcast %cst : f32 to vector<8x128xf32>
      %c0 = arith.constant 0 : index
      %c0_6 = arith.constant 0 : index
      %13 = vector.load %arg9[%c0, %c0_6] : memref<8x128xf32, #tpu.memory_space<vmem>>, vector<8x128xf32>
      tpu.vector_store %arg9[%c0, %c0_6], %12 {strides = array<i32>} : memref<8x128xf32, #tpu.memory_space<vmem>>, vector<8x128xf32>,
    } else {
    }
    %c1_i32 = arith.constant 1 : i32
    %3 = arith.cmpi slt, %arg0, %c1_i32 : i32
    %4 = arith.extui %3 : i1 to i32
    %c0_i32_1 = arith.constant 0 : i32
    %5 = arith.cmpi ne, %4, %c0_i32_1 : i32
    scf.if %5 {
      %c2_i32 = arith.constant 2 : i32
      %12 = arith.remsi %arg0, %c2_i32 : i32
      %c0 = arith.constant 0 : index
      %c0_6 = arith.constant 0 : index
      %13 = vector.load %arg1[%c0, %c0_6] : memref<64x128xf32, #tpu.memory_space<vmem>>, vector<64x128xf32>
      %c0_7 = arith.constant 0 : index
      %c0_8 = arith.constant 0 : index
      %14 = vector.load %arg2[%c0_7, %c0_8] : memref<128x128xf32, #tpu.memory_space<vmem>>, vector<128x128xf32>
      %cst = arith.constant dense<0.000000e+00> : vector<64x128xf32>
      %15 = tpu.matmul %13, %14, %cst {dimension_numbers = #tpu.dot_dimension_numbers<[1], [0], [0], [1], [0, 0, 1, 1], [], []>} : vector<64x128xf32>, vector<128x128xf32>, vector<64x128xf32> -> vector<64x128xf32>
      %c0_9 = arith.constant 0 : index
      %c0_10 = arith.constant 0 : index
      %16 = vector.load %arg4[%c0_9, %c0_10] : memref<1x128xf32, #tpu.memory_space<vmem>>, vector<1x128xf32>
      %17 = vector.broadcast %16 : vector<1x128xf32> to vector<64x128xf32>
      %18 = arith.addf %15, %17 : vector<64x128xf32>
      %c64_i32 = arith.constant 64 : i32
      %19 = arith.muli %12, %c64_i32 : i32
      %20 = tpu.assume_multiple %19, 64 : i32
      %21 = arith.index_cast %20 : i32 to index
      %c0_11 = arith.constant 0 : index
      %22 = vector.load %arg8[%21, %c0_11] : memref<128x128xf32, #tpu.memory_space<vmem>>, vector<64x128xf32>
      tpu.vector_store %arg8[%21, %c0_11], %18 {strides = array<i32>} : memref<128x128xf32, #tpu.memory_space<vmem>>, vector<64x128xf32>,
    } else {
    }
    %c0_i32_2 = arith.constant 0 : i32
    %6 = arith.cmpi sgt, %arg0, %c0_i32_2 : i32
    %7 = arith.extui %6 : i1 to i32
    %c0_i32_3 = arith.constant 0 : i32
    %8 = arith.cmpi ne, %7, %c0_i32_3 : i32
    scf.if %8 {
      %c1_i32_6 = arith.constant 1 : i32
      %12 = arith.subi %arg0, %c1_i32_6 : i32
      %c2_i32 = arith.constant 2 : i32
      %13 = arith.remsi %12, %c2_i32 : i32
      %c0 = arith.constant 0 : index
      %c0_7 = arith.constant 0 : index
      %14 = vector.load %arg3[%c0, %c0_7] : memref<128x128xf32, #tpu.memory_space<vmem>>, vector<128x128xf32>
      %c8_i32 = arith.constant 8 : i32
      %15 = arith.muli %12, %c8_i32 : i32
      %c0_8 = arith.constant 0 : index
      %c0_9 = arith.constant 0 : index
      %16 = vector.load %arg9[%c0_8, %c0_9] : memref<8x128xf32, #tpu.memory_space<vmem>>, vector<8x128xf32>
      %c0_i32_10 = arith.constant 0 : i32
      %c64_i32 = arith.constant 64 : i32
      %17 = arith.muli %13, %c64_i32 : i32
      %c8_i32_11 = arith.constant 8 : i32
      %18 = arith.muli %c0_i32_10, %c8_i32_11 : i32
      %19 = arith.addi %17, %18 : i32
      %20 = tpu.assume_multiple %19, 8 : i32
      %21 = arith.index_cast %20 : i32 to index
      %c0_12 = arith.constant 0 : index
      %22 = vector.load %arg8[%21, %c0_12] : memref<128x128xf32, #tpu.memory_space<vmem>>, vector<8x128xf32>
      %cst = arith.constant dense<0.000000e+00> : vector<8x128xf32>
      %23 = tpu.matmul %16, %14, %cst {dimension_numbers = #tpu.dot_dimension_numbers<[1], [0], [0], [1], [0, 0, 1, 1], [], []>} : vector<8x128xf32>, vector<128x128xf32>, vector<8x128xf32> -> vector<8x128xf32>
      %24 = arith.addf %22, %23 : vector<8x128xf32>
      %25 = math.tanh %24 : vector<8x128xf32>
      %26 = arith.addi %15, %c0_i32_10 : i32
      %c8_i32_13 = arith.constant 8 : i32
      %27 = arith.cmpi slt, %26, %c8_i32_13 : i32
      %28 = arith.select %27, %25, %16 : vector<8x128xf32>
      %c1_i32_14 = arith.constant 1 : i32
      %c64_i32_15 = arith.constant 64 : i32
      %29 = arith.muli %13, %c64_i32_15 : i32
      %c8_i32_16 = arith.constant 8 : i32
      %30 = arith.muli %c1_i32_14, %c8_i32_16 : i32
      %31 = arith.addi %29, %30 : i32
      %32 = tpu.assume_multiple %31, 8 : i32
      %33 = arith.index_cast %32 : i32 to index
      %c0_17 = arith.constant 0 : index
      %34 = vector.load %arg8[%33, %c0_17] : memref<128x128xf32, #tpu.memory_space<vmem>>, vector<8x128xf32>
      %cst_18 = arith.constant dense<0.000000e+00> : vector<8x128xf32>
      %35 = tpu.matmul %28, %14, %cst_18 {dimension_numbers = #tpu.dot_dimension_numbers<[1], [0], [0], [1], [0, 0, 1, 1], [], []>} : vector<8x128xf32>, vector<128x128xf32>, vector<8x128xf32> -> vector<8x128xf32>
      %36 = arith.addf %34, %35 : vector<8x128xf32>
      %37 = math.tanh %36 : vector<8x128xf32>
      %38 = arith.addi %15, %c1_i32_14 : i32
      %c8_i32_19 = arith.constant 8 : i32
      %39 = arith.cmpi slt, %38, %c8_i32_19 : i32
      %40 = arith.select %39, %37, %28 : vector<8x128xf32>
      %c2_i32_20 = arith.constant 2 : i32
      %c64_i32_21 = arith.constant 64 : i32
      %41 = arith.muli %13, %c64_i32_21 : i32
      %c8_i32_22 = arith.constant 8 : i32
      %42 = arith.muli %c2_i32_20, %c8_i32_22 : i32
      %43 = arith.addi %41, %42 : i32
      %44 = tpu.assume_multiple %43, 8 : i32
      %45 = arith.index_cast %44 : i32 to index
      %c0_23 = arith.constant 0 : index
      %46 = vector.load %arg8[%45, %c0_23] : memref<128x128xf32, #tpu.memory_space<vmem>>, vector<8x128xf32>
      %cst_24 = arith.constant dense<0.000000e+00> : vector<8x128xf32>
      %47 = tpu.matmul %40, %14, %cst_24 {dimension_numbers = #tpu.dot_dimension_numbers<[1], [0], [0], [1], [0, 0, 1, 1], [], []>} : vector<8x128xf32>, vector<128x128xf32>, vector<8x128xf32> -> vector<8x128xf32>
      %48 = arith.addf %46, %47 : vector<8x128xf32>
      %49 = math.tanh %48 : vector<8x128xf32>
      %50 = arith.addi %15, %c2_i32_20 : i32
      %c8_i32_25 = arith.constant 8 : i32
      %51 = arith.cmpi slt, %50, %c8_i32_25 : i32
      %52 = arith.select %51, %49, %40 : vector<8x128xf32>
      %c3_i32 = arith.constant 3 : i32
      %c64_i32_26 = arith.constant 64 : i32
      %53 = arith.muli %13, %c64_i32_26 : i32
      %c8_i32_27 = arith.constant 8 : i32
      %54 = arith.muli %c3_i32, %c8_i32_27 : i32
      %55 = arith.addi %53, %54 : i32
      %56 = tpu.assume_multiple %55, 8 : i32
      %57 = arith.index_cast %56 : i32 to index
      %c0_28 = arith.constant 0 : index
      %58 = vector.load %arg8[%57, %c0_28] : memref<128x128xf32, #tpu.memory_space<vmem>>, vector<8x128xf32>
      %cst_29 = arith.constant dense<0.000000e+00> : vector<8x128xf32>
      %59 = tpu.matmul %52, %14, %cst_29 {dimension_numbers = #tpu.dot_dimension_numbers<[1], [0], [0], [1], [0, 0, 1, 1], [], []>} : vector<8x128xf32>, vector<128x128xf32>, vector<8x128xf32> -> vector<8x128xf32>
      %60 = arith.addf %58, %59 : vector<8x128xf32>
      %61 = math.tanh %60 : vector<8x128xf32>
      %62 = arith.addi %15, %c3_i32 : i32
      %c8_i32_30 = arith.constant 8 : i32
      %63 = arith.cmpi slt, %62, %c8_i32_30 : i32
      %64 = arith.select %63, %61, %52 : vector<8x128xf32>
      %c4_i32 = arith.constant 4 : i32
      %c64_i32_31 = arith.constant 64 : i32
      %65 = arith.muli %13, %c64_i32_31 : i32
      %c8_i32_32 = arith.constant 8 : i32
      %66 = arith.muli %c4_i32, %c8_i32_32 : i32
      %67 = arith.addi %65, %66 : i32
      %68 = tpu.assume_multiple %67, 8 : i32
      %69 = arith.index_cast %68 : i32 to index
      %c0_33 = arith.constant 0 : index
      %70 = vector.load %arg8[%69, %c0_33] : memref<128x128xf32, #tpu.memory_space<vmem>>, vector<8x128xf32>
      %cst_34 = arith.constant dense<0.000000e+00> : vector<8x128xf32>
      %71 = tpu.matmul %64, %14, %cst_34 {dimension_numbers = #tpu.dot_dimension_numbers<[1], [0], [0], [1], [0, 0, 1, 1], [], []>} : vector<8x128xf32>, vector<128x128xf32>, vector<8x128xf32> -> vector<8x128xf32>
      %72 = arith.addf %70, %71 : vector<8x128xf32>
      %73 = math.tanh %72 : vector<8x128xf32>
      %74 = arith.addi %15, %c4_i32 : i32
      %c8_i32_35 = arith.constant 8 : i32
      %75 = arith.cmpi slt, %74, %c8_i32_35 : i32
      %76 = arith.select %75, %73, %64 : vector<8x128xf32>
      %c5_i32 = arith.constant 5 : i32
      %c64_i32_36 = arith.constant 64 : i32
      %77 = arith.muli %13, %c64_i32_36 : i32
      %c8_i32_37 = arith.constant 8 : i32
      %78 = arith.muli %c5_i32, %c8_i32_37 : i32
      %79 = arith.addi %77, %78 : i32
      %80 = tpu.assume_multiple %79, 8 : i32
      %81 = arith.index_cast %80 : i32 to index
      %c0_38 = arith.constant 0 : index
      %82 = vector.load %arg8[%81, %c0_38] : memref<128x128xf32, #tpu.memory_space<vmem>>, vector<8x128xf32>
      %cst_39 = arith.constant dense<0.000000e+00> : vector<8x128xf32>
      %83 = tpu.matmul %76, %14, %cst_39 {dimension_numbers = #tpu.dot_dimension_numbers<[1], [0], [0], [1], [0, 0, 1, 1], [], []>} : vector<8x128xf32>, vector<128x128xf32>, vector<8x128xf32> -> vector<8x128xf32>
      %84 = arith.addf %82, %83 : vector<8x128xf32>
      %85 = math.tanh %84 : vector<8x128xf32>
      %86 = arith.addi %15, %c5_i32 : i32
      %c8_i32_40 = arith.constant 8 : i32
      %87 = arith.cmpi slt, %86, %c8_i32_40 : i32
      %88 = arith.select %87, %85, %76 : vector<8x128xf32>
      %c6_i32 = arith.constant 6 : i32
      %c64_i32_41 = arith.constant 64 : i32
      %89 = arith.muli %13, %c64_i32_41 : i32
      %c8_i32_42 = arith.constant 8 : i32
      %90 = arith.muli %c6_i32, %c8_i32_42 : i32
      %91 = arith.addi %89, %90 : i32
      %92 = tpu.assume_multiple %91, 8 : i32
      %93 = arith.index_cast %92 : i32 to index
      %c0_43 = arith.constant 0 : index
      %94 = vector.load %arg8[%93, %c0_43] : memref<128x128xf32, #tpu.memory_space<vmem>>, vector<8x128xf32>
      %cst_44 = arith.constant dense<0.000000e+00> : vector<8x128xf32>
      %95 = tpu.matmul %88, %14, %cst_44 {dimension_numbers = #tpu.dot_dimension_numbers<[1], [0], [0], [1], [0, 0, 1, 1], [], []>} : vector<8x128xf32>, vector<128x128xf32>, vector<8x128xf32> -> vector<8x128xf32>
      %96 = arith.addf %94, %95 : vector<8x128xf32>
      %97 = math.tanh %96 : vector<8x128xf32>
      %98 = arith.addi %15, %c6_i32 : i32
      %c8_i32_45 = arith.constant 8 : i32
      %99 = arith.cmpi slt, %98, %c8_i32_45 : i32
      %100 = arith.select %99, %97, %88 : vector<8x128xf32>
      %c7_i32 = arith.constant 7 : i32
      %c64_i32_46 = arith.constant 64 : i32
      %101 = arith.muli %13, %c64_i32_46 : i32
      %c8_i32_47 = arith.constant 8 : i32
      %102 = arith.muli %c7_i32, %c8_i32_47 : i32
      %103 = arith.addi %101, %102 : i32
      %104 = tpu.assume_multiple %103, 8 : i32
      %105 = arith.index_cast %104 : i32 to index
      %c0_48 = arith.constant 0 : index
      %106 = vector.load %arg8[%105, %c0_48] : memref<128x128xf32, #tpu.memory_space<vmem>>, vector<8x128xf32>
      %cst_49 = arith.constant dense<0.000000e+00> : vector<8x128xf32>
      %107 = tpu.matmul %100, %14, %cst_49 {dimension_numbers = #tpu.dot_dimension_numbers<[1], [0], [0], [1], [0, 0, 1, 1], [], []>} : vector<8x128xf32>, vector<128x128xf32>, vector<8x128xf32> -> vector<8x128xf32>
      %108 = arith.addf %106, %107 : vector<8x128xf32>
      %109 = math.tanh %108 : vector<8x128xf32>
      %110 = arith.addi %15, %c7_i32 : i32
      %c8_i32_50 = arith.constant 8 : i32
      %111 = arith.cmpi slt, %110, %c8_i32_50 : i32
      %112 = arith.select %111, %109, %100 : vector<8x128xf32>
      %c8_i32_51 = arith.constant 8 : i32
      %c0_52 = arith.constant 0 : index
      %c0_53 = arith.constant 0 : index
      %113 = vector.load %arg9[%c0_52, %c0_53] : memref<8x128xf32, #tpu.memory_space<vmem>>, vector<8x128xf32>
      tpu.vector_store %arg9[%c0_52, %c0_53], %112 {strides = array<i32>} : memref<8x128xf32, #tpu.memory_space<vmem>>, vector<8x128xf32>,
    } else {
    }
    %c1_i32_4 = arith.constant 1 : i32
    %9 = arith.cmpi eq, %arg0, %c1_i32_4 : i32
    %10 = arith.extui %9 : i1 to i32
    %c0_i32_5 = arith.constant 0 : i32
    %11 = arith.cmpi ne, %10, %c0_i32_5 : i32
    scf.if %11 {
      %c0 = arith.constant 0 : index
      %c0_6 = arith.constant 0 : index
      %12 = vector.load %arg9[%c0, %c0_6] : memref<8x128xf32, #tpu.memory_space<vmem>>, vector<8x128xf32>
      %c0_7 = arith.constant 0 : index
      %c0_8 = arith.constant 0 : index
      %13 = vector.load %arg5[%c0_7, %c0_8] : memref<128x128xf32, #tpu.memory_space<vmem>>, vector<128x128xf32>
      %cst = arith.constant dense<0.000000e+00> : vector<8x128xf32>
      %14 = tpu.matmul %12, %13, %cst {dimension_numbers = #tpu.dot_dimension_numbers<[1], [0], [0], [1], [0, 0, 1, 1], [], []>} : vector<8x128xf32>, vector<128x128xf32>, vector<8x128xf32> -> vector<8x128xf32>
      %c0_9 = arith.constant 0 : index
      %c0_10 = arith.constant 0 : index
      %15 = vector.load %arg6[%c0_9, %c0_10] : memref<1x128xf32, #tpu.memory_space<vmem>>, vector<1x128xf32>
      %16 = vector.broadcast %15 : vector<1x128xf32> to vector<8x128xf32>
      %17 = arith.addf %14, %16 : vector<8x128xf32>
      %c0_11 = arith.constant 0 : index
      %c0_12 = arith.constant 0 : index
      %18 = vector.load %arg7[%c0_11, %c0_12] : memref<8x128xf32, #tpu.memory_space<vmem>>, vector<8x128xf32>
      tpu.vector_store %arg7[%c0_11, %c0_12], %17 {strides = array<i32>} : memref<8x128xf32, #tpu.memory_space<vmem>>, vector<8x128xf32>,
    } else {
    }
    return
  }
  func.func @transform_0(%arg0: i32) -> (i32, i32) {
    %c0_i32 = arith.constant 0 : i32
    %0 = arith.minsi %arg0, %c0_i32 : i32
    %c0_i32_0 = arith.constant 0 : i32
    %c0_i32_1 = arith.constant 0 : i32
    return %0, %c0_i32_0 : i32, i32
  }
  func.func @transform_1(%arg0: i32) -> (i32, i32) {
    %c0_i32 = arith.constant 0 : i32
    %c0_i32_0 = arith.constant 0 : i32
    %c0_i32_1 = arith.constant 0 : i32
    return %c0_i32, %c0_i32_0 : i32, i32
  }
  func.func @transform_2(%arg0: i32) -> (i32, i32) {
    %c0_i32 = arith.constant 0 : i32
    %c0_i32_0 = arith.constant 0 : i32
    %c0_i32_1 = arith.constant 0 : i32
    return %c0_i32, %c0_i32_0 : i32, i32
  }
  func.func @transform_3(%arg0: i32) -> (i32, i32) {
    %c0_i32 = arith.constant 0 : i32
    %c0_i32_0 = arith.constant 0 : i32
    %c0_i32_1 = arith.constant 0 : i32
    return %c0_i32, %c0_i32_0 : i32, i32
  }
  func.func @transform_4(%arg0: i32) -> (i32, i32) {
    %c0_i32 = arith.constant 0 : i32
    %c0_i32_0 = arith.constant 0 : i32
    %c0_i32_1 = arith.constant 0 : i32
    return %c0_i32, %c0_i32_0 : i32, i32
  }
  func.func @transform_5(%arg0: i32) -> (i32, i32) {
    %c0_i32 = arith.constant 0 : i32
    %c0_i32_0 = arith.constant 0 : i32
    %c0_i32_1 = arith.constant 0 : i32
    return %c0_i32, %c0_i32_0 : i32, i32
  }
  func.func @transform_6(%arg0: i32) -> (i32, i32) {
    %c0_i32 = arith.constant 0 : i32
    %c0_i32_0 = arith.constant 0 : i32
    %c0_i32_1 = arith.constant 0 : i32
    return %c0_i32, %c0_i32_0 : i32, i32
  }
}

</mosaic_0001>

<bundles_post_ra>
// kernel: tpu_custom_call.1
= control target key start
LH: loop header
LB: loop body
LE: loop exit
PB: predicated region body
PF: predicated region fallthrough
CT: control target
= control target key end

     0   :  { %11 = vsyncpa [#allocation5], 0  ;;  %s2987_s0 = inlined_call_operand.hbm [shape: f32[64,128], index: 0, kind: input, shape index: {}]   ;;  %s2988_s1 = inlined_call_operand.hbm [shape: f32[128,128], index: 1, kind: input, shape index: {}]   ;;  %s2989_s2 = inlined_call_operand.hbm [shape: f32[128,128], index: 2, kind: input, shape index: {}]   ;;  %s2990_s3 = inlined_call_operand.vmem [shape: f32[1,128], index: 3, kind: input, shape index: {}]   ;;  %s2991_s4 = inlined_call_operand.hbm [shape: f32[128,128], index: 4, kind: input, shape index: {}]   ;;  %s2992_s5 = inlined_call_operand.vmem [shape: f32[1,128], index: 5, kind: input, shape index: {}]   ;;  %s2993_s6 = inlined_call_operand.hbm [shape: f32[8,128], index: 6, kind: output, shape index: {}]  }
   0x1   :  { %13 = vsyncpa [#allocation5 + $0x1], 0 }
   0x2   :  { %14 = vsyncpa [#allocation8], 0 }
   0x3   :  { %15 = vsyncpa [#allocation11], 0 }
   0x4   :  { %16 = vsyncpa [#allocation6], 0  ;;  %s2543_s21 = smov 0   ;;  %s2545_s22 = smov 0  }
   0x5   :  { %s2547_s23 = smov 0   ;;  %s2549_s24 = smov 0  }
   0x6 LB: > { %s2562_s25 = sadd.s32 4294967295, %s2492_s24   ;;  %p46_p0 = scmp.ne.s32.totalorder %s2484_s22, %s2480_s21  ;;  %s2492_s24 = sphi %s2549_s24, %s3012_s24   ;;  %s2488_s23 = sphi %s2547_s23, %s3011_s23   ;;  %s2484_s22 = sphi %s2545_s22, %s3010_s22   ;;  %s2480_s21 = sphi %s2543_s21, %s3009_s21  }
   0x7   : > { %p2994_p1 = scmp.eq.s32.totalorder %s2562_s25, 0  ;;  %p1360_p2 = scmp.ge.s32.totalorder %s2492_s24, 1 }
   0x8   : > { %p183_p3 = scmp.lt.s32.totalorder %s2492_s24, 3  ;;  %s2494_s28 = smov [#allocation7]  }
   0x9   : > { %p2571_p5 = por %p2994_p1, %p46_p0  ;;  %s195_s29 = sshll.u32 %s2494_s28, 4  ;;  %s2579_s29 = int_to_ptr.vmem [resolvable:$true] %s195_s29 }
   0xa   : > { %p2575_p6 = pnand %p1360_p2, %p183_p3  ;;  %s2495_s7 = smov [#allocation9]  }
   0xb   : > { %s2997_s26 = scalar_select %p2571_p5, 1, 0 }
   0xc   : > { %s2998_s27 = scalar_select %p2575_p6, 1, 0 }
   0xd   : > { %p2222_p7 = pneg %p2575_p6  ;;  %s208_s8 = sshll.u32 %s2495_s7, 4  ;;  %s2589_s8 = int_to_ptr.vmem [resolvable:$true] %s208_s8 }
   0xe   : > { %s2496_s9 = smov [#allocation10]   ;;  %s2306_s13 = scalar_lea.hbm %s2988_s1, 2048 }
   0xf   : > { %p2585_p8 = pnand %p2222_p7, %p2994_p1  ;;  %s2591_s10 = sshll.u32 %s2496_s9, 4  ;;  %s225_s10 = int_to_ptr.vmem [resolvable:$true] %s2591_s10 }
  0x10   : > { %p2307_p9 = scmp.ne.s32.totalorder %s2988_s1, %s2306_s13  ;;  %p2313_p13 = scmp.lt.u32.totalorder %s2306_s13, %s2988_s1 }
  0x11   : > { %p2601_p10 = pneg %p2585_p8 }
  0x13   : > { %p2309_p11 = pnand %p2601_p10, %p2307_p9 }
  0x15   : > { %p2310_p12 = pneg %p2309_p11 }
  0x17   : > { %p2315_p0 = pnand %p2313_p13, %p2310_p12 }
  0x19   : > { %2318 = shalt.err (!%p2315_p0)
}
  0x1a   : > { %s2319_s19 = scalar_lea.vmem %s2579_s29, 2048  ;;  %p2327_p4 = scmp.lt.s32.totalorder %s2579_s29, %s2579_s29 }
  0x1b   : > { %p2320_p2 = scmp.ne.s32.totalorder %s2579_s29, %s2319_s19  ;;  %p2328_p1 = scmp.lt.s32.totalorder %s2319_s19, %s2319_s19 }
  0x1d   : > { %p2322_p3 = pnand %p2320_p2, %p2601_p10  ;;  %p2329_p9 = por %p2328_p1, %p2327_p4 }
  0x1f   : > { %p2323_p7 = pneg %p2322_p3 }
  0x21   : > { %p2330_p11 = pnand %p2329_p9, %p2323_p7 }
  0x23   : > { %2333 = shalt.err (!%p2330_p11)
}
  0x24   : > { %s2497_s20 = smov 128   ;;  %s2498_s21 = smov 8  }
  0x25   : > { %2225 = dma.hbm_to_vmem [thread:$0]  (!%p2585_p8), %s2988_s1, 2048, %s2579_s29, [#allocation8], %s2497_s20, %s2497_s20, %s2498_s21  }
  0x26   : > { %s2334_s12 = scalar_lea.hbm %s2989_s2, 2048 }
  0x27   : > { %p2335_p1 = scmp.ne.s32.totalorder %s2989_s2, %s2334_s12  ;;  %p2341_p13 = scmp.lt.u32.totalorder %s2334_s12, %s2989_s2 }
  0x29   : > { %p2337_p4 = pnand %p2335_p1, %p2601_p10 }
  0x2b   : > { %p2338_p12 = pneg %p2337_p4 }
  0x2d   : > { %p2343_p0 = pnand %p2341_p13, %p2338_p12 }
  0x2f   : > { %2346 = shalt.err (!%p2343_p0)
}
  0x30   : > { %s2347_s29 = scalar_lea.vmem %s2589_s8, 2048  ;;  %p2355_p9 = scmp.lt.s32.totalorder %s2589_s8, %s2589_s8 }
  0x31   : > { %p2348_p2 = scmp.ne.s32.totalorder %s2589_s8, %s2347_s29  ;;  %p2356_p11 = scmp.lt.s32.totalorder %s2347_s29, %s2347_s29 }
  0x33   : > { %p2350_p3 = pnand %p2348_p2, %p2601_p10  ;;  %p2357_p1 = por %p2356_p11, %p2355_p9 }
  0x35   : > { %p2351_p7 = pneg %p2350_p3 }
  0x37   : > { %p2358_p4 = pnand %p2357_p1, %p2351_p7 }
  0x39   : > { %2361 = shalt.err (!%p2358_p4)
}
  0x3a   : > { %2228 = dma.hbm_to_vmem [thread:$0]  (!%p2585_p8), %s2989_s2, 2048, %s2589_s8, [#allocation8], %s2497_s20, %s2497_s20, %s2498_s21  }
  0x3b   : > { %s2362_s9 = scalar_lea.hbm %s2991_s4, 2048 }
  0x3c   : > { %p2363_p12 = scmp.ne.s32.totalorder %s2991_s4, %s2362_s9  ;;  %p2369_p2 = scmp.lt.u32.totalorder %s2362_s9, %s2991_s4 }
  0x3e   : > { %p2365_p13 = pnand %p2363_p12, %p2601_p10 }
  0x40   : > { %p2366_p0 = pneg %p2365_p13 }
  0x42   : > { %p2371_p3 = pnand %p2369_p2, %p2366_p0 }
  0x44   : > { %2374 = shalt.err (!%p2371_p3)
}
  0x45   : > { %s2375_s15 = scalar_lea.vmem %s225_s10, 2048  ;;  %p2383_p1 = scmp.lt.s32.totalorder %s225_s10, %s225_s10 }
  0x46   : > { %p2376_p7 = scmp.ne.s32.totalorder %s225_s10, %s2375_s15  ;;  %p2384_p4 = scmp.lt.s32.totalorder %s2375_s15, %s2375_s15 }
  0x48   : > { %p2378_p9 = pnand %p2376_p7, %p2601_p10  ;;  %p2385_p5 = por %p2384_p4, %p2383_p1 }
  0x4a   : > { %p2379_p11 = pneg %p2378_p9 }
  0x4c   : > { %p2386_p6 = pnand %p2385_p5, %p2379_p11 }
  0x4e   : > { %2389 = shalt.err (!%p2386_p6)
}
  0x4f   : > { %2231 = dma.hbm_to_vmem [thread:$0]  (!%p2585_p8), %s2991_s4, 2048, %s225_s10, [#allocation11], %s2497_s20, %s2497_s20, %s2498_s21  }
  0x50   : > { %s2674_s16 = sadd.s32 1, %s2492_s24   ;;  %p26_p5 = scmp.lt.s32.totalorder %s2492_s24, 0 }
  0x51   : > { %p28_p6 = scmp.lt.s32.totalorder %s2674_s16, 0  ;;  %s33_s30 = sadd.s32 1, %s2488_s23 }
  0x52   : > { %p40_p10 = scmp.ne.s32.totalorder %s2488_s23, %s2484_s22  ;;  %p41_p12 = scmp.eq.s32.totalorder %s2492_s24, 0 }
  0x53   : > { %s27_s29 = scalar_select %p26_p5, %s2492_s24, 0 }
  0x54   : > { %s29_s18 = scalar_select %p28_p6, %s2674_s16, 0 }
  0x55   : > { %p2239_p13 = scmp.lt.s32.totalorder %s2492_s24, 2  ;;  %s241_s28 = sand.u32 1, %s2488_s23  }
  0x56   : > { %s30_s19 = ssub.s32 %s27_s29, %s29_s18  ;;  %p42_p2 = por %p41_p12, %p40_p10 }
  0x57   : > { %p31_p0 = scmp.eq.s32.totalorder %s30_s19, 0  ;;  %s1365_s7 = sshll.u32 %s241_s28, 6 }
  0x58   : > { %s1403_s10 = sshll.u32 %s27_s29, 10  ;;  %s245_s14 = scalar_lea.vmem [#allocation4], %s1365_s7 }
  0x59   : > { %s2687_s9 = scalar_select %p31_p0, %s2488_s23, %s33_s30  }
  0x5a   : > { %s2692_s13 = scalar_lea.hbm %s2987_s0, %s1403_s10  ;;  %s254_s15 = sshll.u32 %s245_s14, 4  ;;  %s2694_s15 = int_to_ptr.vmem [resolvable:$true] %s254_s15 }
  0x5b   : > { %p2696_p8 = pnand %p2239_p13, %p42_p2  ;;  %s2700_s8 = scalar_lea.sflag [#allocation5], %s241_s28 }
  0x5c   : > { %s2390_s17 = scalar_lea.hbm %s2692_s13, 1024  ;;  %s2395_s18 = scalar_lea.hbm %s2987_s0, 1024 }
  0x5d   : > { %p2391_p3 = scmp.ne.s32.totalorder %s2692_s13, %s2390_s17  ;;  %p2392_p7 = pneg %p2696_p8 }
  0x5e   : > { %p2396_p1 = scmp.lt.u32.totalorder %s2692_s13, %s2987_s0  ;;  %p2397_p4 = scmp.lt.u32.totalorder %s2395_s18, %s2390_s17 }
  0x5f   : > { %p2393_p9 = pnand %p2392_p7, %p2391_p3  ;;  %p2399_p6 = scmp.lt.u32.totalorder %s2390_s17, %s2692_s13 }
  0x60   : > { %p2398_p5 = por %p2397_p4, %p2396_p1 }
  0x61   : > { %p2394_p11 = pneg %p2393_p9 }
  0x62   : > { %p2400_p10 = por %p2399_p6, %p2398_p5 }
  0x64   : > { %p2401_p12 = pnand %p2400_p10, %p2394_p11 }
  0x66   : > { %2404 = shalt.err (!%p2401_p12)
}
  0x67   : > { %s2405_s28 = scalar_lea.vmem %s2694_s15, 1024  ;;  %s2499_s10 = smov [#allocation4]  }
  0x68   : > { %p2406_p13 = scmp.ne.s32.totalorder %s2694_s15, %s2405_s28  ;;  %s2410_s11 = sshll.u32 %s2499_s10, 4  ;;  %s2411_s11 = int_to_ptr.vmem [resolvable:$false] %s2410_s11 }
  0x69   : > { %s2412_s12 = scalar_lea.vmem %s2411_s11, 2048  ;;  %p2413_p3 = scmp.lt.s32.totalorder %s2694_s15, %s2411_s11 }
  0x6a   : > { %p2408_p0 = pnand %p2406_p13, %p2392_p7  ;;  %p2414_p9 = scmp.lt.s32.totalorder %s2412_s12, %s2405_s28 }
  0x6c   : > { %p2409_p2 = pneg %p2408_p0  ;;  %p2415_p1 = por %p2414_p9, %p2413_p3 }
  0x6e   : > { %p2416_p4 = pnand %p2415_p1, %p2409_p2 }
  0x70   : > { %2419 = shalt.err (!%p2416_p4)
}
  0x71   : > { %2235 = dma.hbm_to_vmem [thread:$0]  (!%p2696_p8), %s2692_s13, 1024, %s2694_s15, %s2700_s8, %s2497_s20, %s2497_s20, %s2498_s21  }
  0x72   : > { %p3002_p7 = scmp.ne.s32.totalorder %s2998_s27, 0 }
  0x73   : > { %s268_s14 = sand.u32 (!%p3002_p7), 1, %s2484_s22   ;;  %p3003_p11 = scmp.ne.s32.totalorder (!%p3002_p7), %s2997_s26, 0 }
  0x74   : > { %266 = sbr.rel (%p3002_p7) target bundleno = 2514 (0x9d2), region = 44  ;;  %s1369_s17 = sshll.u32 (!%p3002_p7), %s268_s14, 6 }
  0x75   : > { %s269_s30 = scalar_lea.sflag (!%p3002_p7), [#allocation5], %s268_s14  ;;  %s2734_s29 = scalar_lea.vmem (!%p3002_p7), [#allocation4], %s1369_s17 }
  0x7b   : > { %2463 = dma.done.wait (%p3003_p11), %s269_s30, 1024  }
  0x7c   : > { %2465 = vsyncadd (%p3003_p11), %s269_s30, 4294966272  ;;  %p3004_p5 = scmp.eq.s32.totalorder %s2562_s25, 0 }
  0x7e   : > { %2467 = dma.done.wait (%p3004_p5), [#allocation8], 4096   ;;  %p3005_p8 = pmov %p3004_p5 }
  0x7f   : > { %p3006_p6 = pmov %p3004_p5 }
  0x80   : > { %2469 = vsyncadd (%p3005_p8), [#allocation8], 4294963200 }
  0x81   : > { %2471 = dma.done.wait (%p3006_p6), [#allocation11], 2048   ;;  %p3007_p10 = pmov %p3004_p5 }
  0x82   : > { %p3008_p12 = scmp.ne.s32.totalorder %s2562_s25, 0 }
  0x83   : > { %2473 = vsyncadd (%p3007_p10), [#allocation11], 4294965248  ;;  %v2500_v0 = vmov (!%p3008_p12), 0.0  }
  0x84   : > { %314 = sbr.rel (%p3008_p12) target bundleno = 139 (0x8b), region = 64  ;;  %315 = vst [vmem:[#allocation3] sm:$0xff] (!%p3008_p12), %v2500_v0 }
  0x8b PF: > { %p1374_p13 = scmp.ge.s32.totalorder %s2562_s25, 1 }
  0x8c   : > { %v334_v1 = vld [vmem:[#allocation7] sm:$0xff] (!%p1374_p13)  ;;  %v335_v2 = vld [vmem:[#allocation7 + $0x8] sm:$0xff] (!%p1374_p13)  ;;  %v336_v3 = vld [vmem:[#allocation7 + $0x10] sm:$0xff] (!%p1374_p13)  ;;  %s321_s26 = ssub.s32 (!%p1374_p13), 0, %s2562_s25  ;;  %p320_p0 = scmp.lt.s32.totalorder (!%p1374_p13), %s2562_s25, 0 }
  0x8d   : > { %319 = sbr.rel (%p1374_p13) target bundleno = 395 (0x18b), region = 68  ;;  %v1940_v4 = vpack.c.bf16 (!%p1374_p13), %v335_v2, %v334_v1  ;;  %v337_v5 = vld [vmem:[#allocation7 + $0x18] sm:$0xff] (!%p1374_p13)  ;;  %v338_v7 = vld [vmem:[#allocation7 + $0x20] sm:$0xff] (!%p1374_p13)  ;;  %v339_v8 = vld [vmem:[#allocation7 + $0x28] sm:$0xff] (!%p1374_p13)  ;;  %s1375_s27 = smin.u32 (!%p1374_p13), %s2562_s25, %s321_s26 }
  0x8e   : > { %v1944_v6 = vpack.c.bf16 (!%p1374_p13), %v337_v5, %v336_v3  ;;  %v1948_v9 = vpack.c.bf16 (!%p1374_p13), %v339_v8, %v338_v7  ;;  %v326_v10 = vld [vmem:[%s2734_s29] sm:$0xff] (!%p1374_p13)  ;;  %v340_v12 = vld [vmem:[#allocation7 + $0x30] sm:$0xff] (!%p1374_p13)  ;;  %v341_v13 = vld [vmem:[#allocation7 + $0x38] sm:$0xff] (!%p1374_p13)  ;;  %s323_s20 = sand.u32 (!%p1374_p13), 1, %s1375_s27  }
  0x8f   : > { %1941 = vmatprep.subr.bf16.mxu0 (!%p1374_p13), %v1940_v4  ;;  %2188 = vmatprep.subr.bf16.mxu1 (!%p1374_p13), %v1940_v4  ;;  %v330_v11 = vld [vmem:[%s2734_s29 + $0x20] sm:$0xff] (!%p1374_p13)  ;;  %v1952_v14 = vpack.c.bf16 (!%p1374_p13), %v341_v13, %v340_v12  ;;  %v343_v16 = vld [vmem:[#allocation7 + $0x48] sm:$0xff] (!%p1374_p13)  ;;  %v344_v18 = vld [vmem:[#allocation7 + $0x50] sm:$0xff] (!%p1374_p13)  ;;  %s324_s21 = ssub.s32 (!%p1374_p13), 0, %s323_s20 }
  0x90   : > { %1943 = vmatpush3.bf16.msra.mxu0 (!%p1374_p13), %v1940_v4  ;;  %2196 = vmatpush3.bf16.msra.mxu1 (!%p1374_p13), %v1940_v4  ;;  %v342_v15 = vld [vmem:[#allocation7 + $0x40] sm:$0xff] (!%p1374_p13)  ;;  %v345_v19 = vld [vmem:[#allocation7 + $0x58] sm:$0xff] (!%p1374_p13)  ;;  %v347_v22 = vld [vmem:[#allocation7 + $0x68] sm:$0xff] (!%p1374_p13) }
  0x91   : > { %1945 = vmatprep.subr.bf16.mxu0 (!%p1374_p13), %v1944_v6  ;;  %2189 = vmatprep.subr.bf16.mxu1 (!%p1374_p13), %v1944_v6  ;;  %v1956_v17 = vpack.c.bf16 (!%p1374_p13), %v343_v16, %v342_v15  ;;  %v1960_v20 = vpack.c.bf16 (!%p1374_p13), %v345_v19, %v344_v18  ;;  %v346_v21 = vld [vmem:[#allocation7 + $0x60] sm:$0xff] (!%p1374_p13)  ;;  %v348_v24 = vld [vmem:[#allocation7 + $0x70] sm:$0xff] (!%p1374_p13)  ;;  %v349_v25 = vld [vmem:[#allocation7 + $0x78] sm:$0xff] (!%p1374_p13) }
  0x92   : > { %1613 = vmatprep.mubr.f32.mxu0 (!%p1374_p13), %v326_v10  ;;  %1619 = vmatprep.mubr.f32.mxu1 (!%p1374_p13), %v330_v11  ;;  %v1964_v23 = vpack.c.bf16 (!%p1374_p13), %v347_v22, %v346_v21  ;;  %v1968_v26 = vpack.c.bf16 (!%p1374_p13), %v349_v25, %v348_v24  ;;  %v327_v27 = vld [vmem:[%s2734_s29 + $0x8] sm:$0xff] (!%p1374_p13)  ;;  %v328_v29 = vld [vmem:[%s2734_s29 + $0x10] sm:$0xff] (!%p1374_p13)  ;;  %v329_v31 = vld [vmem:[%s2734_s29 + $0x18] sm:$0xff] (!%p1374_p13) }
  0x93   : > { %v331_v28 = vld [vmem:[%s2734_s29 + $0x28] sm:$0xff] (!%p1374_p13)  ;;  %v332_v30 = vld [vmem:[%s2734_s29 + $0x30] sm:$0xff] (!%p1374_p13)  ;;  %v333_v32 = vld [vmem:[%s2734_s29 + $0x38] sm:$0xff] (!%p1374_p13) }
  0x94   : > { %1947 = vmatpush3.bf16.msra.mxu0 %v1944_v6  ;;  %2197 = vmatpush3.bf16.msra.mxu1 %v1944_v6  ;;  %s3014_s21 = smov (!%p320_p0, %s324_s21), %s323_s20  ;;  %v1376_v33 = vld [vmem:[%s2990_s3] ss:$0 sm:$0xff] }
  0x95   : > { %1949 = vmatprep.subr.bf16.mxu0 %v1948_v9  ;;  %2190 = vmatprep.subr.bf16.mxu1 %v1948_v9  ;;  %s1377_s13 = sshll.u32 %s3014_s21, 6 }
  0x96   : > { %s463_s8 = scalar_lea.vmem [#allocation2], %s1377_s13 }
  0x98   : > { %1951 = vmatpush3.bf16.msra.mxu0 %v1948_v9  ;;  %2198 = vmatpush3.bf16.msra.mxu1 %v1948_v9 }
  0x99   : > { %1953 = vmatprep.subr.bf16.mxu0 %v1952_v14  ;;  %2191 = vmatprep.subr.bf16.mxu1 %v1952_v14 }
  0x9c   : > { %1955 = vmatpush3.bf16.msra.mxu0 %v1952_v14  ;;  %2199 = vmatpush3.bf16.msra.mxu1 %v1952_v14 }
  0x9d   : > { %1957 = vmatprep.subr.bf16.mxu0 %v1956_v17  ;;  %2192 = vmatprep.subr.bf16.mxu1 %v1956_v17 }
  0xa0   : > { %1959 = vmatpush3.bf16.msra.mxu0 %v1956_v17  ;;  %2200 = vmatpush3.bf16.msra.mxu1 %v1956_v17 }
  0xa1   : > { %1961 = vmatprep.subr.bf16.mxu0 %v1960_v20  ;;  %2193 = vmatprep.subr.bf16.mxu1 %v1960_v20 }
  0xa4   : > { %1963 = vmatpush3.bf16.msra.mxu0 %v1960_v20  ;;  %2201 = vmatpush3.bf16.msra.mxu1 %v1960_v20 }
  0xa5   : > { %1965 = vmatprep.subr.bf16.mxu0 %v1964_v23  ;;  %2194 = vmatprep.subr.bf16.mxu1 %v1964_v23 }
  0xa8   : > { %1967 = vmatpush3.bf16.msra.mxu0 %v1964_v23  ;;  %2202 = vmatpush3.bf16.msra.mxu1 %v1964_v23 }
  0xa9   : > { %1969 = vmatprep.subr.bf16.mxu0 %v1968_v26  ;;  %2195 = vmatprep.subr.bf16.mxu1 %v1968_v26 }
  0xac   : > { %1971 = vmatpush3.bf16.msra.mxu0 %v1968_v26  ;;  %2203 = vmatpush3.bf16.msra.mxu1 %v1968_v26 }
  0xaf   : > { %1614 = vmatmul.mubr.f32.vlgmr.msra.gmra.mrb[0].mxu0 %v327_v27  ;;  %1620 = vmatmul.mubr.f32.vlgmr.msra.gmra.mrb[0].mxu1 %v331_v28 }
  0xb0   : > { %1616 = vmatprep.mubr.f32.mxu0 %v328_v29  ;;  %1622 = vmatprep.mubr.f32.mxu1 %v332_v30 }
  0xb3   : > { %1617 = vmatmul.mubr.f32.gmra.mrb[2].mxu0 %v329_v31  ;;  %1623 = vmatmul.mubr.f32.gmra.mrb[2].mxu1 %v333_v32 }
 0x182   : > { %v1615_v34 = vpop.f32.mrb[0].mxu0  ;;  %v1621_v35 = vpop.f32.mrb[0].mxu1 }
 0x183   : > { %v429_v36 = vadd.f32 %v1615_v34, %v1376_v33  ;;  %v449_v37 = vadd.f32 %v1621_v35, %v1376_v33  ;;  %v423_v38 = vpop.f32.mrb[1].mxu0  ;;  %v443_v39 = vpop.f32.mrb[1].mxu1 }
 0x184   : > { %v424_v40 = vadd.f32 %v1376_v33, %v423_v38  ;;  %v444_v41 = vadd.f32 %v1376_v33, %v443_v39 }
 0x185   : > { %465 = vst [vmem:[%s463_s8 + $0x8] sm:$0xff] %v429_v36  ;;  %469 = vst [vmem:[%s463_s8 + $0x28] sm:$0xff] %v449_v37 }
 0x186   : > { %464 = vst [vmem:[%s463_s8] sm:$0xff] %v424_v40  ;;  %468 = vst [vmem:[%s463_s8 + $0x20] sm:$0xff] %v444_v41  ;;  %v1618_v42 = vpop.f32.mrb[2].mxu0  ;;  %v1624_v43 = vpop.f32.mrb[2].mxu1 }
 0x187   : > { %v439_v44 = vadd.f32 %v1618_v42, %v1376_v33  ;;  %v459_v45 = vadd.f32 %v1624_v43, %v1376_v33  ;;  %v433_v46 = vpop.f32.mrb[3].mxu0  ;;  %v453_v47 = vpop.f32.mrb[3].mxu1 }
 0x188   : > { %v434_v48 = vadd.f32 %v1376_v33, %v433_v46  ;;  %v454_v49 = vadd.f32 %v1376_v33, %v453_v47 }
 0x189   : > { %467 = vst [vmem:[%s463_s8 + $0x18] sm:$0xff] %v439_v44  ;;  %471 = vst [vmem:[%s463_s8 + $0x38] sm:$0xff] %v459_v45 }
 0x18a   : > { %466 = vst [vmem:[%s463_s8 + $0x10] sm:$0xff] %v434_v48  ;;  %470 = vst [vmem:[%s463_s8 + $0x30] sm:$0xff] %v454_v49 }
 0x18b PF: > { %p1378_p2 = scmp.le.s32.totalorder %s2562_s25, 0 }
 0x18c   : > { %v483_v50 = vld [vmem:[#allocation9] sm:$0xff] (!%p1378_p2)  ;;  %v484_v51 = vld [vmem:[#allocation9 + $0x8] sm:$0xff] (!%p1378_p2)  ;;  %v485_v52 = vld [vmem:[#allocation9 + $0x10] sm:$0xff] (!%p1378_p2)  ;;  %v2501_v53 = vmov (!%p1378_p2), 0.0|0.0   ;;  %vm2502_vm0 = vmmov (!%p1378_p2), 0   ;;  %v2503_v56 = vmov (!%p1378_p2), 0.0  }
 0x18d   : > { %475 = sbr.rel (%p1378_p2) target bundleno = 2239 (0x8bf), region = 72  ;;  %1972 = vmatprep.subr.bf16.mxu0 (!%p1378_p2), %v2501_v53  ;;  %v2767_v54 = vpack.c.bf16 (!%p1378_p2), %v484_v51, %v483_v50  ;;  %v486_v55 = vld [vmem:[#allocation9 + $0x18] sm:$0xff] (!%p1378_p2)  ;;  %1657 = vmatprep.mubr.msk.f32.mxu0 (!%p1378_p2), %vm2502_vm0, %v2503_v56  ;;  %v487_v58 = vld [vmem:[#allocation9 + $0x20] sm:$0xff] (!%p1378_p2)  ;;  %v488_v59 = vld [vmem:[#allocation9 + $0x28] sm:$0xff] (!%p1378_p2)  ;;  %s1379_s18 = sadd.s32 (!%p1378_p2), 4294967295, %s2562_s25 }
 0x18e   : > { %1996 = vmatprep.subr.bf16.mxu1 (!%p1378_p2), %v2501_v53  ;;  %1692 = vmatprep.mubr.msk.f32.mxu1 (!%p1378_p2), %vm2502_vm0, %v2503_v56  ;;  %v2775_v57 = vpack.c.bf16 (!%p1378_p2), %v486_v55, %v485_v52  ;;  %v2781_v60 = vpack.c.bf16 (!%p1378_p2), %v488_v59, %v487_v58  ;;  %v489_v61 = vld [vmem:[#allocation9 + $0x30] sm:$0xff] (!%p1378_p2)  ;;  %v490_v62 = vld [vmem:[#allocation9 + $0x38] sm:$0xff] (!%p1378_p2)  ;;  %v491_v0 = vld [vmem:[#allocation9 + $0x40] sm:$0xff] (!%p1378_p2)  ;;  %s478_s19 = ssub.s32 (!%p1378_p2), 0, %s1379_s18  ;;  %p477_p3 = scmp.lt.s32.totalorder (!%p1378_p2), %s1379_s18, 0 }
 0x18f   : > { %1974 = vmatpush3.bf16.msra.mxu0 (!%p1378_p2), %v2767_v54  ;;  %1998 = vmatpush3.bf16.msra.mxu1 (!%p1378_p2), %v2767_v54  ;;  %v2787_v63 = vpack.c.bf16 (!%p1378_p2), %v490_v62, %v489_v61  ;;  %v492_v1 = vld [vmem:[#allocation9 + $0x48] sm:$0xff] (!%p1378_p2)  ;;  %v493_v3 = vld [vmem:[#allocation9 + $0x50] sm:$0xff] (!%p1378_p2)  ;;  %v494_v4 = vld [vmem:[#allocation9 + $0x58] sm:$0xff] (!%p1378_p2)  ;;  %s1380_s7 = smin.u32 (!%p1378_p2), %s1379_s18, %s478_s19  ;;  %s2839_s12 = sshll.u32 (!%p1378_p2), %s1379_s18, 3 }
 0x190   : > { %1975 = vmatprep.subr.bf16.mxu0 (!%p1378_p2), %v2501_v53  ;;  %1999 = vmatprep.subr.bf16.mxu1 (!%p1378_p2), %v2501_v53  ;;  %v2793_v2 = vpack.c.bf16 (!%p1378_p2), %v492_v1, %v491_v0  ;;  %v2799_v5 = vpack.c.bf16 (!%p1378_p2), %v494_v4, %v493_v3  ;;  %v495_v6 = vld [vmem:[#allocation9 + $0x60] sm:$0xff] (!%p1378_p2)  ;;  %v496_v7 = vld [vmem:[#allocation9 + $0x68] sm:$0xff] (!%p1378_p2)  ;;  %v497_v9 = vld [vmem:[#allocation9 + $0x70] sm:$0xff] (!%p1378_p2)  ;;  %s480_s28 = sand.u32 (!%p1378_p2), 1, %s1380_s7   ;;  %p576_p9 = scmp.lt.s32.totalorder (!%p1378_p2), %s2839_s12, 8 }
 0x191   : > { %v2805_v8 = vpack.c.bf16 (!%p1378_p2), %v496_v7, %v495_v6  ;;  %v498_v10 = vld [vmem:[#allocation9 + $0x78] sm:$0xff] (!%p1378_p2)  ;;  %s481_s10 = ssub.s32 (!%p1378_p2), 0, %s480_s28  ;;  %s656_s30 = sadd.s32 (!%p1378_p2), 1, %s2839_s12 }
 0x192   : > { %v2811_v11 = vpack.c.bf16 (!%p1378_p2), %v498_v10, %v497_v9  ;;  %v500_v12 = vld [vmem:[#allocation3] sm:$0xff] (!%p1378_p2)  ;;  %p657_p1 = scmp.lt.s32.totalorder (!%p1378_p2), %s656_s30, 8  ;;  %s737_s26 = sadd.s32 (!%p1378_p2), 2, %s2839_s12 }
 0x193   : > { %1977 = vmatpush3.bf16.msra.mxu0 (!%p1378_p2), %v2775_v57  ;;  %2001 = vmatpush3.bf16.msra.mxu1 (!%p1378_p2), %v2775_v57  ;;  %p738_p4 = scmp.lt.s32.totalorder (!%p1378_p2), %s737_s26, 8  ;;  %s818_s20 = sadd.s32 (!%p1378_p2), 3, %s2839_s12 }
 0x194   : > { %1978 = vmatprep.subr.bf16.mxu0 %v2501_v53  ;;  %2002 = vmatprep.subr.bf16.mxu1 %v2501_v53  ;;  %s3016_s10 = smov (!%p477_p3, %s481_s10), %s480_s28  ;;  %p819_p7 = scmp.lt.s32.totalorder %s818_s20, 8 }
 0x195   : > { %s1382_s11 = sshll.u32 %s3016_s10, 6  ;;  %s899_s13 = sadd.s32 4, %s2839_s12 }
 0x196   : > { %s2841_s14 = scalar_lea.vmem [#allocation2], %s1382_s11  ;;  %p900_p11 = scmp.lt.s32.totalorder %s899_s13, 8 }
 0x197   : > { %1980 = vmatpush3.bf16.msra.mxu0 %v2781_v60  ;;  %2004 = vmatpush3.bf16.msra.mxu1 %v2781_v60  ;;  %v503_v13 = vld [vmem:[%s2841_s14] sm:$0xff]  ;;  %s577_s17 = scalar_select %p576_p9, 1, 0  ;;  %v1384_v20 = vld [vmem:[%s2841_s14 + $0x8] sm:$0xff]  ;;  %v1386_v27 = vld [vmem:[%s2841_s14 + $0x10] sm:$0xff] }
 0x198   : > { %1981 = vmatprep.subr.bf16.mxu0 %v2501_v53  ;;  %2005 = vmatprep.subr.bf16.mxu1 %v2501_v53  ;;  %s658_s29 = scalar_select %p657_p1, 1, 0  ;;  %v1388_v34 = vld [vmem:[%s2841_s14 + $0x18] sm:$0xff]  ;;  %v1390_v41 = vld [vmem:[%s2841_s14 + $0x20] sm:$0xff]  ;;  %v1392_v48 = vld [vmem:[%s2841_s14 + $0x28] sm:$0xff] }
 0x199   : > { %v578_v17 = vstv %s577_s17  ;;  %s739_s27 = scalar_select %p738_p4, 1, 0  ;;  %v1396_v62 = vld [vmem:[%s2841_s14 + $0x38] sm:$0xff] }
 0x19a   : > { %vm579_vm1 = vcmp.eq.s32.totalorder %v578_v17, 1  ;;  %v659_v24 = vstv %s658_s29  ;;  %s820_s21 = scalar_select %p819_p7, 1, 0 }
 0x19b   : > { %1983 = vmatpush3.bf16.msra.mxu0 %v2787_v63  ;;  %2007 = vmatpush3.bf16.msra.mxu1 %v2787_v63  ;;  %vm660_vm2 = vcmp.eq.s32.totalorder %v659_v24, 1  ;;  %v740_v31 = vstv %s739_s27  ;;  %s901_s15 = scalar_select %p900_p11, 1, 0 }
 0x19c   : > { %1984 = vmatprep.subr.bf16.mxu0 %v2501_v53  ;;  %2008 = vmatprep.subr.bf16.mxu1 %v2501_v53  ;;  %vm741_vm3 = vcmp.eq.s32.totalorder %v740_v31, 1  ;;  %v821_v38 = vstv %s820_s21  ;;  %s980_s24 = sadd.s32 5, %s2839_s12  ;;  %s1061_s18 = sadd.s32 6, %s2839_s12 }
 0x19d   : > { %vm822_vm4 = vcmp.eq.s32.totalorder %v821_v38, 1  ;;  %v902_v45 = vstv %s901_s15  ;;  %p981_p5 = scmp.lt.s32.totalorder %s980_s24, 8  ;;  %p1062_p8 = scmp.lt.s32.totalorder %s1061_s18, 8 }
 0x19e   : > { %vm903_vm5 = vcmp.eq.s32.totalorder %v902_v45, 1  ;;  %s1142_s7 = sadd.s32 7, %s2839_s12 }
 0x19f   : > { %1986 = vmatpush3.bf16.msra.mxu0 %v2793_v2  ;;  %2010 = vmatpush3.bf16.msra.mxu1 %v2793_v2  ;;  %s982_s8 = scalar_select %p981_p5, 1, 0 }
 0x1a0   : > { %1987 = vmatprep.subr.bf16.mxu0 %v2501_v53  ;;  %2011 = vmatprep.subr.bf16.mxu1 %v2501_v53  ;;  %s1063_s19 = scalar_select %p1062_p8, 1, 0 }
 0x1a1   : > { %v983_v52 = vstv %s982_s8  ;;  %p1143_p6 = scmp.lt.s32.totalorder %s1142_s7, 8 }
 0x1a2   : > { %vm984_vm6 = vcmp.eq.s32.totalorder %v983_v52, 1  ;;  %v1064_v59 = vstv %s1063_s19 }
 0x1a3   : > { %1989 = vmatpush3.bf16.msra.mxu0 %v2799_v5  ;;  %2013 = vmatpush3.bf16.msra.mxu1 %v2799_v5  ;;  %vm1065_vm7 = vcmp.eq.s32.totalorder %v1064_v59, 1  ;;  %s1144_s28 = scalar_select %p1143_p6, 1, 0 }
 0x1a4   : > { %1990 = vmatprep.subr.bf16.mxu0 %v2501_v53  ;;  %2014 = vmatprep.subr.bf16.mxu1 %v2501_v53 }
 0x1a7   : > { %1992 = vmatpush3.bf16.msra.mxu0 %v2805_v8  ;;  %2016 = vmatpush3.bf16.msra.mxu1 %v2805_v8 }
 0x1a8   : > { %1993 = vmatprep.subr.bf16.mxu0 %v2501_v53  ;;  %2017 = vmatprep.subr.bf16.mxu1 %v2501_v53 }
 0x1ab   : > { %1995 = vmatpush3.bf16.msra.mxu0 %v2811_v11  ;;  %2019 = vmatpush3.bf16.msra.mxu1 %v2811_v11 }
 0x1ac   : > { %2020 = vmatprep.subr.bf16.mxu0 %v2501_v53  ;;  %2044 = vmatprep.subr.bf16.mxu1 %v2501_v53 }
 0x1ae   : > { %1658 = vmatmul.mubr.f32.vlgmr.msra.gmra.mrb[0].mxu0 %v500_v12 }
 0x1af   : > { %2022 = vmatpush3.bf16.msra.mxu0 %v2767_v54  ;;  %1727 = vmatprep.mubr.msk.f32.mxu0 %vm2502_vm0, %v2503_v56 }
 0x1b0   : > { %2023 = vmatprep.subr.bf16.mxu0 %v2501_v53 }
 0x1b3   : > { %2025 = vmatpush3.bf16.msra.mxu0 %v2775_v57 }
 0x1b4   : > { %2026 = vmatprep.subr.bf16.mxu0 %v2501_v53 }
 0x1b7   : > { %2028 = vmatpush3.bf16.msra.mxu0 %v2781_v60 }
 0x1b8   : > { %2029 = vmatprep.subr.bf16.mxu0 %v2501_v53 }
 0x1bb   : > { %2031 = vmatpush3.bf16.msra.mxu0 %v2787_v63 }
 0x1bc   : > { %2032 = vmatprep.subr.bf16.mxu0 %v2501_v53 }
 0x1bf   : > { %2034 = vmatpush3.bf16.msra.mxu0 %v2793_v2 }
 0x1c0   : > { %2035 = vmatprep.subr.bf16.mxu0 %v2501_v53 }
 0x1c3   : > { %2037 = vmatpush3.bf16.msra.mxu0 %v2799_v5 }
 0x1c4   : > { %2038 = vmatprep.subr.bf16.mxu0 %v2501_v53 }
 0x1c7   : > { %2040 = vmatpush3.bf16.msra.mxu0 %v2805_v8 }
 0x1c8   : > { %2041 = vmatprep.subr.bf16.mxu0 %v2501_v53 }
 0x1cb   : > { %2043 = vmatpush3.bf16.msra.mxu0 %v2811_v11 }
 0x1cc   : > { %2068 = vmatprep.subr.bf16.mxu0 %v2501_v53 }
 0x281   : > { %v570_v14 = vpop.f32.mrb[0].mxu0 }
 0x282   : > { %v574_v15 = vadd.f32 %v570_v14, %v503_v13  ;;  %v1659_v16 = vpop.f32.mrb[1].mxu0 }
 0x284   : > { %2290 = vtanh.f32 %v574_v15 }
 0x28e   : > { %v2291_v18 = vpop.eup %2290 }
 0x28f   : > { %v580_v19 = vsel %vm579_vm1, %v2291_v18, %v500_v12 }
 0x290   : > { %1693 = vmatmul.mubr.f32.vlgmr.msra.gmra.mrb[0].mxu1 %v580_v19 }
 0x291   : > { %2046 = vmatpush3.bf16.msra.mxu1 %v2767_v54  ;;  %1762 = vmatprep.mubr.msk.f32.mxu1 %vm2502_vm0, %v2503_v56 }
 0x292   : > { %2047 = vmatprep.subr.bf16.mxu1 %v2501_v53 }
 0x295   : > { %2049 = vmatpush3.bf16.msra.mxu1 %v2775_v57 }
 0x296   : > { %2050 = vmatprep.subr.bf16.mxu1 %v2501_v53 }
 0x299   : > { %2052 = vmatpush3.bf16.msra.mxu1 %v2781_v60 }
 0x29a   : > { %2053 = vmatprep.subr.bf16.mxu1 %v2501_v53 }
 0x29d   : > { %2055 = vmatpush3.bf16.msra.mxu1 %v2787_v63 }
 0x29e   : > { %2056 = vmatprep.subr.bf16.mxu1 %v2501_v53 }
 0x2a1   : > { %2058 = vmatpush3.bf16.msra.mxu1 %v2793_v2 }
 0x2a2   : > { %2059 = vmatprep.subr.bf16.mxu1 %v2501_v53 }
 0x2a5   : > { %2061 = vmatpush3.bf16.msra.mxu1 %v2799_v5 }
 0x2a6   : > { %2062 = vmatprep.subr.bf16.mxu1 %v2501_v53 }
 0x2a9   : > { %2064 = vmatpush3.bf16.msra.mxu1 %v2805_v8 }
 0x2aa   : > { %2065 = vmatprep.subr.bf16.mxu1 %v2501_v53 }
 0x2ad   : > { %2067 = vmatpush3.bf16.msra.mxu1 %v2811_v11 }
 0x2ae   : > { %2092 = vmatprep.subr.bf16.mxu1 %v2501_v53 }
 0x363   : > { %v650_v21 = vpop.f32.mrb[0].mxu1 }
 0x364   : > { %v654_v22 = vadd.f32 %v1384_v20, %v650_v21  ;;  %v1694_v23 = vpop.f32.mrb[1].mxu1 }
 0x366   : > { %2292 = vtanh.f32 %v654_v22 }
 0x370   : > { %v2293_v25 = vpop.eup %2292 }
 0x371   : > { %v661_v26 = vsel %vm660_vm2, %v2293_v25, %v580_v19 }
 0x372   : > { %1728 = vmatmul.mubr.f32.vlgmr.msra.gmra.mrb[2].mxu0 %v661_v26 }
 0x373   : > { %2070 = vmatpush3.bf16.msra.mxu0 %v2767_v54  ;;  %1797 = vmatprep.mubr.msk.f32.mxu0 %vm2502_vm0, %v2503_v56 }
 0x374   : > { %2071 = vmatprep.subr.bf16.mxu0 %v2501_v53 }
 0x377   : > { %2073 = vmatpush3.bf16.msra.mxu0 %v2775_v57 }
 0x378   : > { %2074 = vmatprep.subr.bf16.mxu0 %v2501_v53 }
 0x37b   : > { %2076 = vmatpush3.bf16.msra.mxu0 %v2781_v60 }
 0x37c   : > { %2077 = vmatprep.subr.bf16.mxu0 %v2501_v53 }
 0x37f   : > { %2079 = vmatpush3.bf16.msra.mxu0 %v2787_v63 }
 0x380   : > { %2080 = vmatprep.subr.bf16.mxu0 %v2501_v53 }
 0x383   : > { %2082 = vmatpush3.bf16.msra.mxu0 %v2793_v2 }
 0x384   : > { %2083 = vmatprep.subr.bf16.mxu0 %v2501_v53 }
 0x387   : > { %2085 = vmatpush3.bf16.msra.mxu0 %v2799_v5 }
 0x388   : > { %2086 = vmatprep.subr.bf16.mxu0 %v2501_v53 }
 0x38b   : > { %2088 = vmatpush3.bf16.msra.mxu0 %v2805_v8 }
 0x38c   : > { %2089 = vmatprep.subr.bf16.mxu0 %v2501_v53 }
 0x38f   : > { %2091 = vmatpush3.bf16.msra.mxu0 %v2811_v11 }
 0x390   : > { %2116 = vmatprep.subr.bf16.mxu0 %v2501_v53 }
 0x445   : > { %v731_v28 = vpop.f32.mrb[2].mxu0 }
 0x446   : > { %v735_v29 = vadd.f32 %v1386_v27, %v731_v28  ;;  %v1729_v30 = vpop.f32.mrb[3].mxu0 }
 0x448   : > { %2294 = vtanh.f32 %v735_v29 }
 0x452   : > { %v2295_v32 = vpop.eup %2294 }
 0x453   : > { %v742_v33 = vsel %vm741_vm3, %v2295_v32, %v661_v26 }
 0x454   : > { %1763 = vmatmul.mubr.f32.vlgmr.msra.gmra.mrb[2].mxu1 %v742_v33 }
 0x455   : > { %2094 = vmatpush3.bf16.msra.mxu1 %v2767_v54  ;;  %1832 = vmatprep.mubr.msk.f32.mxu1 %vm2502_vm0, %v2503_v56 }
 0x456   : > { %2095 = vmatprep.subr.bf16.mxu1 %v2501_v53 }
 0x459   : > { %2097 = vmatpush3.bf16.msra.mxu1 %v2775_v57 }
 0x45a   : > { %2098 = vmatprep.subr.bf16.mxu1 %v2501_v53 }
 0x45d   : > { %2100 = vmatpush3.bf16.msra.mxu1 %v2781_v60 }
 0x45e   : > { %2101 = vmatprep.subr.bf16.mxu1 %v2501_v53 }
 0x461   : > { %2103 = vmatpush3.bf16.msra.mxu1 %v2787_v63 }
 0x462   : > { %2104 = vmatprep.subr.bf16.mxu1 %v2501_v53 }
 0x465   : > { %2106 = vmatpush3.bf16.msra.mxu1 %v2793_v2 }
 0x466   : > { %2107 = vmatprep.subr.bf16.mxu1 %v2501_v53 }
 0x469   : > { %2109 = vmatpush3.bf16.msra.mxu1 %v2799_v5 }
 0x46a   : > { %2110 = vmatprep.subr.bf16.mxu1 %v2501_v53 }
 0x46d   : > { %2112 = vmatpush3.bf16.msra.mxu1 %v2805_v8 }
 0x46e   : > { %2113 = vmatprep.subr.bf16.mxu1 %v2501_v53 }
 0x471   : > { %2115 = vmatpush3.bf16.msra.mxu1 %v2811_v11 }
 0x472   : > { %2140 = vmatprep.subr.bf16.mxu1 %v2501_v53 }
 0x527   : > { %v812_v35 = vpop.f32.mrb[2].mxu1 }
 0x528   : > { %v816_v36 = vadd.f32 %v1388_v34, %v812_v35  ;;  %v1764_v37 = vpop.f32.mrb[3].mxu1 }
 0x52a   : > { %2296 = vtanh.f32 %v816_v36 }
 0x534   : > { %v2297_v39 = vpop.eup %2296 }
 0x535   : > { %v823_v40 = vsel %vm822_vm4, %v2297_v39, %v742_v33 }
 0x536   : > { %1798 = vmatmul.mubr.f32.vlgmr.msra.gmra.mrb[4].mxu0 %v823_v40 }
 0x537   : > { %2118 = vmatpush3.bf16.msra.mxu0 %v2767_v54  ;;  %1867 = vmatprep.mubr.msk.f32.mxu0 %vm2502_vm0, %v2503_v56 }
 0x538   : > { %2119 = vmatprep.subr.bf16.mxu0 %v2501_v53 }
 0x53b   : > { %2121 = vmatpush3.bf16.msra.mxu0 %v2775_v57 }
 0x53c   : > { %2122 = vmatprep.subr.bf16.mxu0 %v2501_v53 }
 0x53f   : > { %2124 = vmatpush3.bf16.msra.mxu0 %v2781_v60 }
 0x540   : > { %2125 = vmatprep.subr.bf16.mxu0 %v2501_v53 }
 0x543   : > { %2127 = vmatpush3.bf16.msra.mxu0 %v2787_v63 }
 0x544   : > { %2128 = vmatprep.subr.bf16.mxu0 %v2501_v53 }
 0x547   : > { %2130 = vmatpush3.bf16.msra.mxu0 %v2793_v2 }
 0x548   : > { %2131 = vmatprep.subr.bf16.mxu0 %v2501_v53 }
 0x54b   : > { %2133 = vmatpush3.bf16.msra.mxu0 %v2799_v5 }
 0x54c   : > { %2134 = vmatprep.subr.bf16.mxu0 %v2501_v53 }
 0x54f   : > { %2136 = vmatpush3.bf16.msra.mxu0 %v2805_v8 }
 0x550   : > { %2137 = vmatprep.subr.bf16.mxu0 %v2501_v53 }
 0x553   : > { %2139 = vmatpush3.bf16.msra.mxu0 %v2811_v11 }
 0x609   : > { %v893_v42 = vpop.f32.mrb[4].mxu0 }
 0x60a   : > { %v897_v43 = vadd.f32 %v1390_v41, %v893_v42  ;;  %v1799_v44 = vpop.f32.mrb[5].mxu0 }
 0x60c   : > { %2298 = vtanh.f32 %v897_v43 }
 0x616   : > { %v2299_v46 = vpop.eup %2298 }
 0x617   : > { %v904_v47 = vsel %vm903_vm5, %v2299_v46, %v823_v40 }
 0x618   : > { %1833 = vmatmul.mubr.f32.vlgmr.msra.gmra.mrb[4].mxu1 %v904_v47 }
 0x619   : > { %2142 = vmatpush3.bf16.msra.mxu1 %v2767_v54  ;;  %1902 = vmatprep.mubr.msk.f32.mxu1 %vm2502_vm0, %v2503_v56 }
 0x61a   : > { %2143 = vmatprep.subr.bf16.mxu1 %v2501_v53 }
 0x61d   : > { %2145 = vmatpush3.bf16.msra.mxu1 %v2775_v57 }
 0x61e   : > { %2146 = vmatprep.subr.bf16.mxu1 %v2501_v53 }
 0x621   : > { %2148 = vmatpush3.bf16.msra.mxu1 %v2781_v60 }
 0x622   : > { %2149 = vmatprep.subr.bf16.mxu1 %v2501_v53 }
 0x625   : > { %2151 = vmatpush3.bf16.msra.mxu1 %v2787_v63 }
 0x626   : > { %2152 = vmatprep.subr.bf16.mxu1 %v2501_v53 }
 0x629   : > { %2154 = vmatpush3.bf16.msra.mxu1 %v2793_v2  ;;  %v1145_v2 = vstv %s1144_s28 }
 0x62a   : > { %2155 = vmatprep.subr.bf16.mxu1 %v2501_v53  ;;  %vm1146_vm8 = vcmp.eq.s32.totalorder %v1145_v2, 1 }
 0x62d   : > { %2157 = vmatpush3.bf16.msra.mxu1 %v2799_v5 }
 0x62e   : > { %2158 = vmatprep.subr.bf16.mxu1 %v2501_v53 }
 0x631   : > { %2160 = vmatpush3.bf16.msra.mxu1 %v2805_v8 }
 0x632   : > { %2161 = vmatprep.subr.bf16.mxu1 %v2501_v53  ;;  %v1394_v53 = vld [vmem:[%s2841_s14 + $0x30] sm:$0xff] }
 0x635   : > { %2163 = vmatpush3.bf16.msra.mxu1 %v2811_v11 }
 0x6eb   : > { %v974_v49 = vpop.f32.mrb[4].mxu1 }
 0x6ec   : > { %v978_v50 = vadd.f32 %v1392_v48, %v974_v49  ;;  %v1834_v51 = vpop.f32.mrb[5].mxu1 }
 0x6ee   : > { %2300 = vtanh.f32 %v978_v50 }
 0x6f8   : > { %v2301_v54 = vpop.eup %2300 }
 0x6f9   : > { %v985_v55 = vsel %vm984_vm6, %v2301_v54, %v904_v47 }
 0x6fa   : > { %1868 = vmatmul.mubr.f32.vlgmr.msra.gmra.mrb[6].mxu0 %v985_v55 }
 0x7cd   : > { %v1055_v56 = vpop.f32.mrb[6].mxu0 }
 0x7ce   : > { %v1059_v57 = vadd.f32 %v1394_v53, %v1055_v56  ;;  %v1869_v58 = vpop.f32.mrb[7].mxu0 }
 0x7d0   : > { %2302 = vtanh.f32 %v1059_v57 }
 0x7da   : > { %v2303_v60 = vpop.eup %2302 }
 0x7db   : > { %v1066_v61 = vsel %vm1065_vm7, %v2303_v60, %v985_v55 }
 0x7dc   : > { %1903 = vmatmul.mubr.f32.vlgmr.msra.gmra.mrb[6].mxu1 %v1066_v61 }
 0x8af   : > { %v1136_v63 = vpop.f32.mrb[6].mxu1 }
 0x8b0   : > { %v1140_v0 = vadd.f32 %v1396_v62, %v1136_v63  ;;  %v1904_v1 = vpop.f32.mrb[7].mxu1 }
 0x8b2   : > { %2304 = vtanh.f32 %v1140_v0 }
 0x8bc   : > { %v2305_v3 = vpop.eup %2304 }
 0x8bd   : > { %v1147_v4 = vsel %vm1146_vm8, %v2305_v3, %v1066_v61 }
 0x8be   : > { %1148 = vst [vmem:[#allocation3] sm:$0xff] %v1147_v4 }
 0x8bf PF: > { %p1397_p10 = scmp.ne.s32.totalorder %s2562_s25, 1 }
 0x8c0   : > { %v1154_v5 = vld [vmem:[#allocation10] sm:$0xff] (!%p1397_p10)  ;;  %v1155_v6 = vld [vmem:[#allocation10 + $0x8] sm:$0xff] (!%p1397_p10)  ;;  %v1156_v7 = vld [vmem:[#allocation10 + $0x10] sm:$0xff] (!%p1397_p10)  ;;  %v2504_v8 = vmov (!%p1397_p10), 0.0|0.0   ;;  %vm2505_vm9 = vmmov (!%p1397_p10), 0   ;;  %v2506_v11 = vmov (!%p1397_p10), 0.0  }
 0x8c1   : > { %1152 = sbr.rel (%p1397_p10) target bundleno = 2489 (0x9b9), region = 76  ;;  %2164 = vmatprep.subr.bf16.mxu0 (!%p1397_p10), %v2504_v8  ;;  %v2165_v9 = vpack.c.bf16 (!%p1397_p10), %v1155_v6, %v1154_v5  ;;  %v1157_v10 = vld [vmem:[#allocation10 + $0x18] sm:$0xff] (!%p1397_p10)  ;;  %1937 = vmatprep.mubr.msk.f32.mxu0 (!%p1397_p10), %vm2505_vm9, %v2506_v11  ;;  %v1158_v13 = vld [vmem:[#allocation10 + $0x20] sm:$0xff] (!%p1397_p10)  ;;  %v1159_v14 = vld [vmem:[#allocation10 + $0x28] sm:$0xff] (!%p1397_p10) }
 0x8c2   : > { %v2168_v12 = vpack.c.bf16 (!%p1397_p10), %v1157_v10, %v1156_v7  ;;  %v2171_v15 = vpack.c.bf16 (!%p1397_p10), %v1159_v14, %v1158_v13  ;;  %v1160_v16 = vld [vmem:[#allocation10 + $0x30] sm:$0xff] (!%p1397_p10)  ;;  %v1161_v17 = vld [vmem:[#allocation10 + $0x38] sm:$0xff] (!%p1397_p10)  ;;  %v1162_v19 = vld [vmem:[#allocation10 + $0x40] sm:$0xff] (!%p1397_p10) }
 0x8c3   : > { %2166 = vmatpush3.bf16.msra.mxu0 (!%p1397_p10), %v2165_v9  ;;  %v2174_v18 = vpack.c.bf16 (!%p1397_p10), %v1161_v17, %v1160_v16  ;;  %v1163_v20 = vld [vmem:[#allocation10 + $0x48] sm:$0xff] (!%p1397_p10)  ;;  %v1164_v22 = vld [vmem:[#allocation10 + $0x50] sm:$0xff] (!%p1397_p10)  ;;  %v1165_v23 = vld [vmem:[#allocation10 + $0x58] sm:$0xff] (!%p1397_p10) }
 0x8c4   : > { %2167 = vmatprep.subr.bf16.mxu0 (!%p1397_p10), %v2504_v8  ;;  %v2177_v21 = vpack.c.bf16 (!%p1397_p10), %v1163_v20, %v1162_v19  ;;  %v2180_v24 = vpack.c.bf16 (!%p1397_p10), %v1165_v23, %v1164_v22  ;;  %v1166_v25 = vld [vmem:[#allocation10 + $0x60] sm:$0xff] (!%p1397_p10)  ;;  %v1167_v26 = vld [vmem:[#allocation10 + $0x68] sm:$0xff] (!%p1397_p10)  ;;  %v1168_v28 = vld [vmem:[#allocation10 + $0x70] sm:$0xff] (!%p1397_p10) }
 0x8c5   : > { %v2183_v27 = vpack.c.bf16 (!%p1397_p10), %v1167_v26, %v1166_v25  ;;  %v1169_v29 = vld [vmem:[#allocation10 + $0x78] sm:$0xff] (!%p1397_p10) }
 0x8c6   : > { %v2186_v30 = vpack.c.bf16 (!%p1397_p10), %v1169_v29, %v1168_v28  ;;  %v1153_v31 = vld [vmem:[#allocation3] sm:$0xff] (!%p1397_p10) }
 0x8c7   : > { %2169 = vmatpush3.bf16.msra.mxu0 (!%p1397_p10), %v2168_v12  ;;  %v1398_v32 = vld [vmem:[%s2992_s5] ss:$0 sm:$0xff] (!%p1397_p10) }
 0x8c8   : > { %2170 = vmatprep.subr.bf16.mxu0 %v2504_v8 }
 0x8cb   : > { %2172 = vmatpush3.bf16.msra.mxu0 %v2171_v15 }
 0x8cc   : > { %2173 = vmatprep.subr.bf16.mxu0 %v2504_v8 }
 0x8cf   : > { %2175 = vmatpush3.bf16.msra.mxu0 %v2174_v18 }
 0x8d0   : > { %2176 = vmatprep.subr.bf16.mxu0 %v2504_v8 }
 0x8d3   : > { %2178 = vmatpush3.bf16.msra.mxu0 %v2177_v21 }
 0x8d4   : > { %2179 = vmatprep.subr.bf16.mxu0 %v2504_v8 }
 0x8d7   : > { %2181 = vmatpush3.bf16.msra.mxu0 %v2180_v24 }
 0x8d8   : > { %2182 = vmatprep.subr.bf16.mxu0 %v2504_v8 }
 0x8db   : > { %2184 = vmatpush3.bf16.msra.mxu0 %v2183_v27 }
 0x8dc   : > { %2185 = vmatprep.subr.bf16.mxu0 %v2504_v8 }
 0x8df   : > { %2187 = vmatpush3.bf16.msra.mxu0 %v2186_v30 }
 0x8e2   : > { %1938 = vmatmul.mubr.f32.vlgmr.msra.gmra.mrb[0].mxu0 %v1153_v31 }
 0x9b5   : > { %v1243_v33 = vpop.f32.mrb[0].mxu0 }
 0x9b6   : > { %v1244_v34 = vadd.f32 %v1398_v32, %v1243_v33  ;;  %v1939_v35 = vpop.f32.mrb[1].mxu0 }
 0x9b8   : > { %1247 = vst [vmem:[#allocation12] sm:$0xff] %v1244_v34 }
 0x9b9 PF: > { %p2243_p12 = scmp.eq.s32.totalorder %s2562_s25, 1  ;;  %s2507_s12 = smov [#allocation12]  }
 0x9ba   : > { %s1255_s14 = sshll.u32 %s2507_s12, 4  ;;  %s1256_s14 = int_to_ptr.vmem [resolvable:$true] %s1255_s14 }
 0x9bb   : > { %s2420_s17 = scalar_lea.vmem %s1256_s14, 128  ;;  %p2427_p3 = scmp.lt.s32.totalorder %s1256_s14, %s1256_s14 }
 0x9bc   : > { %p2421_p13 = scmp.ne.s32.totalorder %s1256_s14, %s2420_s17  ;;  %p2428_p9 = scmp.lt.s32.totalorder %s2420_s17, %s2420_s17 }
 0x9be   : > { %p2422_p0 = pnand %p2421_p13, %p2243_p12  ;;  %p2429_p1 = por %p2428_p9, %p2427_p3 }
 0x9c0   : > { %p2423_p2 = pneg %p2422_p0 }
 0x9c2   : > { %p2430_p4 = pnand %p2429_p1, %p2423_p2 }
 0x9c4   : > { %2433 = shalt.err (!%p2430_p4)
}
 0x9c5   : > { %s2434_s26 = scalar_lea.hbm %s2993_s6, 128 }
 0x9c6   : > { %p2435_p7 = scmp.ne.s32.totalorder %s2993_s6, %s2434_s26  ;;  %p2440_p8 = scmp.lt.u32.totalorder %s2434_s26, %s2993_s6 }
 0x9c8   : > { %p2436_p11 = pnand %p2435_p7, %p2243_p12 }
 0x9ca   : > { %p2437_p5 = pneg %p2436_p11 }
 0x9cc   : > { %p2442_p6 = pnand %p2440_p8, %p2437_p5 }
 0x9ce   : > { %2445 = shalt.err (!%p2442_p6)
}
 0x9cf   : > { %2219 = dma.vmem_to_hbm [thread:$0]  (%p2243_p12), %s1256_s14, 128, %s2993_s6, [#allocation6]  }
 0x9d0   : > { %2475 = dma.done.wait (%p2243_p12), [#allocation6], 128  }
 0x9d1   : > { %2477 = vsyncadd (%p2243_p12), [#allocation6], 4294967168 }
 0x9d2 PF: > { %p19_p10 = scmp.ge.s32.totalorder %s2674_s16, 4   ;;  %s3009_s21 = smov %s2484_s22 }
 0x9d3   : > { %s3010_s22 = smov %s2488_s23  ;;  %s3011_s23 = smov %s2687_s9 }
 0x9d4   : > { %s3012_s24 = smov %s2674_s16  ;;  %21 = sbr.rel (!%p19_p10) target bundleno = 6 (0x6), region = 118 }
 0x9db   :  { %1268 = vsyncpa [#allocation5], 1 }
 0x9dc   :  { %1270 = vsyncpa [#allocation5 + $0x1], 1 }
 0x9dd   :  { %1271 = vsyncpa [#allocation8], 1 }
 0x9de   :  { %1272 = vsyncpa [#allocation11], 1 }
 0x9df   :  { %1273 = vsyncpa [#allocation6], 1 }
 0x9e0   :  { %1275 = vsyncpa [#allocation6 + $0x1], 1 }

</bundles_post_ra>
